<compile_context>
chip_gen: v7x
topology: tpu7x:2x2x1
jax: 0.10.0
libtpu: 0.0.40
codegen_flags: <defaults>
</compile_context>

<pallas_src>
import jax
import jax.numpy as jnp
from jax.experimental import pallas as pl
from jax.experimental.pallas import tpu as pltpu

# "StaticParameters" stand-ins (synthetic, deterministic, small).
INPUT = 32        # StaticParameters.INPUT
HIDDEN_1 = 64     # StaticParameters.HIDDEN_1
OUTPUT = 10       # StaticParameters.OUTPUT

HIDDEN_PAD = 128  # pad hidden so 2nd matmul K fills a 128-wide MXU
OUT_PAD = 128     # lane-dense output slab (unmasked vector stores)


def _round_up(n, m):
    return ((n + m - 1) // m) * m


def _mlp_kernel(x_ref, w1_ref, b1_ref, w2_ref, b2_ref, o_ref):
    # fc1: x @ W1 (bf16 -> f32 acc), + b1 (f32), ReLU
    h = jnp.dot(x_ref[...], w1_ref[...], preferred_element_type=jnp.float32)
    h = jnp.maximum(h + b1_ref[...], 0.0)
    # fc2: h @ W2 (bf16 -> f32 acc), + b2 (f32)
    out = jnp.dot(h.astype(jnp.bfloat16), w2_ref[...],
                  preferred_element_type=jnp.float32)
    o_ref[...] = (out + b2_ref[...]).astype(o_ref.dtype)


def prepare_params(w1, b1, w2, b2):
    """One-time preprocessing of PyTorch-layout params.

    w1 : (HIDDEN_1, INPUT), b1 : (HIDDEN_1,)
    w2 : (OUTPUT, HIDDEN_1), b2 : (OUTPUT,)
    Returns padded, transposed, bf16 weights + f32 2-D biases ready for the kernel.
    """
    w1_t = jnp.zeros((INPUT, HIDDEN_PAD), jnp.bfloat16)
    w1_t = w1_t.at[:, :HIDDEN_1].set(w1.T.astype(jnp.bfloat16))
    b1_2d = jnp.zeros((1, HIDDEN_PAD), jnp.float32).at[:, :HIDDEN_1].set(b1)
    w2_t = jnp.zeros((HIDDEN_PAD, OUT_PAD), jnp.bfloat16)
    w2_t = w2_t.at[:HIDDEN_1, :OUTPUT].set(w2.T.astype(jnp.bfloat16))
    b2_2d = jnp.zeros((1, OUT_PAD), jnp.float32).at[:, :OUTPUT].set(b2)
    return w1_t, b1_2d, w2_t, b2_2d


def neural_net_1layer_forward(x, params, *, tile_b=512):
    """Forward pass of NeuralNet1Layer.

    x      : (B, INPUT) float32 (or bf16)
    params : output of prepare_params(...)
    returns (B, OUTPUT) float32
    """
    w1_t, b1_2d, w2_t, b2_2d = params
    B = x.shape[0]

    # Batch tile: multiple of 8 sublanes, capped at tile_b; keeps per-step
    # VMEM (double-buffered x + out tiles + resident weights) well under the
    # v7x 64 MiB budget while being big enough to hit HBM roofline for large B.
    TB = min(tile_b, _round_up(B, 8))
    B_pad = _round_up(B, TB)

    x_bf = x.astype(jnp.bfloat16)
    if B_pad != B:
        x_bf = jnp.pad(x_bf, ((0, B_pad - B), (0, 0)))

    grid = (B_pad // TB,)

    out_padded = pl.pallas_call(
        _mlp_kernel,
        out_shape=jax.ShapeDtypeStruct((B_pad, OUT_PAD), jnp.float32),
        grid=grid,
        in_specs=[
            pl.BlockSpec((TB, INPUT), lambda i: (i, 0)),            # x tile streams
            pl.BlockSpec((INPUT, HIDDEN_PAD), lambda i: (0, 0)),    # weights stay
            pl.BlockSpec((1, HIDDEN_PAD), lambda i: (0, 0)),        # VMEM-resident
            pl.BlockSpec((HIDDEN_PAD, OUT_PAD), lambda i: (0, 0)),
            pl.BlockSpec((1, OUT_PAD), lambda i: (0, 0)),
        ],
        out_specs=pl.BlockSpec((TB, OUT_PAD), lambda i: (i, 0)),
        compiler_params=pltpu.CompilerParams(
            dimension_semantics=("parallel",)),                     # megacore on v7x
    )(x_bf, w1_t, b1_2d, w2_t, b2_2d)

    return out_padded[:B, :OUTPUT]


def _init_params(key):
    """Deterministic init mimicking nn.Linear default (uniform +/- 1/sqrt(fan_in))."""
    k1, k2, k3, k4 = jax.random.split(key, 4)
    lim1 = 1.0 / jnp.sqrt(jnp.float32(INPUT))
    lim2 = 1.0 / jnp.sqrt(jnp.float32(HIDDEN_1))
    w1 = jax.random.uniform(k1, (HIDDEN_1, INPUT), jnp.float32, -lim1, lim1)
    b1 = jax.random.uniform(k2, (HIDDEN_1,), jnp.float32, -lim1, lim1)
    w2 = jax.random.uniform(k3, (OUTPUT, HIDDEN_1), jnp.float32, -lim2, lim2)
    b2 = jax.random.uniform(k4, (OUTPUT,), jnp.float32, -lim2, lim2)
    return w1, b1, w2, b2


if __name__ == "__main__":
    key = jax.random.PRNGKey(0)
    k_x, k_p = jax.random.split(key)

    # Small shapes; batch=20 (not a multiple of 8) + tile_b=8 exercises the
    # batch grid (3 steps), batch padding, and the output slab slice.
    batch = 20
    x = jax.random.normal(k_x, (batch, INPUT), jnp.float32)
    w1, b1, w2, b2 = _init_params(k_p)

    params = prepare_params(w1, b1, w2, b2)   # one-time preprocessing
    out = neural_net_1layer_forward(x, params, tile_b=8)
    out = jax.block_until_ready(out)

    # Pure-JAX reference with the same bf16 input/weight rounding (f32 accumulation).
    x_r = x.astype(jnp.bfloat16).astype(jnp.float32)
    w1_r = w1.astype(jnp.bfloat16).astype(jnp.float32)
    w2_r = w2.astype(jnp.bfloat16).astype(jnp.float32)
    h_r = jnp.maximum(x_r @ w1_r.T + b1, 0.0)
    ref = h_r.astype(jnp.bfloat16).astype(jnp.float32) @ w2_r.T + b2

    assert out.shape == (batch, OUTPUT)
    assert jnp.allclose(out, ref, atol=1e-4, rtol=1e-3), (
        float(jnp.max(jnp.abs(out - ref))))

    print("KERNEL_OK")
</pallas_src>

<mosaic_0001>
module attributes {stable_mosaic.version = 11 : i64} {
  func.func @_mlp_kernel(%arg0: i32, %arg1: memref<8x32xbf16, #tpu.memory_space<vmem>>, %arg2: memref<32x128xbf16, #tpu.memory_space<vmem>>, %arg3: memref<1x128xf32, #tpu.memory_space<vmem>>, %arg4: memref<128x128xbf16, #tpu.memory_space<vmem>>, %arg5: memref<1x128xf32, #tpu.memory_space<vmem>>, %arg6: memref<8x128xf32, #tpu.memory_space<vmem>>) attributes {dimension_semantics = [#tpu.dimension_semantics<parallel>], iteration_bounds = array<i64: 3>, scalar_prefetch = 0 : i64, scratch_operands = 0 : i64, tpu.core_type = #tpu.core_type<tc>, window_params = [{transform_indices = @transform_0, window_bounds = array<i64: 8, 32>}, {pipeline_mode = #tpu.pipeline_mode<synchronous>, transform_indices = @transform_1, window_bounds = array<i64: 32, 128>}, {pipeline_mode = #tpu.pipeline_mode<synchronous>, transform_indices = @transform_2, window_bounds = array<i64: 1, 128>}, {pipeline_mode = #tpu.pipeline_mode<synchronous>, transform_indices = @transform_3, window_bounds = array<i64: 128, 128>}, {pipeline_mode = #tpu.pipeline_mode<synchronous>, transform_indices = @transform_4, window_bounds = array<i64: 1, 128>}, {transform_indices = @transform_5, window_bounds = array<i64: 8, 128>}]} {
    %c0 = arith.constant 0 : index
    %c0_0 = arith.constant 0 : index
    %0 = vector.load %arg1[%c0, %c0_0] : memref<8x32xbf16, #tpu.memory_space<vmem>>, vector<8x32xbf16>
    %c0_1 = arith.constant 0 : index
    %c0_2 = arith.constant 0 : index
    %1 = vector.load %arg2[%c0_1, %c0_2] : memref<32x128xbf16, #tpu.memory_space<vmem>>, vector<32x128xbf16>
    %cst = arith.constant dense<0.000000e+00> : vector<8x128xf32>
    %2 = tpu.matmul %0, %1, %cst {dimension_numbers = #tpu.dot_dimension_numbers<[1], [0], [0], [1], [0, 0, 1, 1], [], []>} : vector<8x32xbf16>, vector<32x128xbf16>, vector<8x128xf32> -> vector<8x128xf32>
    %c0_3 = arith.constant 0 : index
    %c0_4 = arith.constant 0 : index
    %3 = vector.load %arg3[%c0_3, %c0_4] : memref<1x128xf32, #tpu.memory_space<vmem>>, vector<1x128xf32>
    %4 = vector.broadcast %3 : vector<1x128xf32> to vector<8x128xf32>
    %5 = arith.addf %2, %4 : vector<8x128xf32>
    %cst_5 = arith.constant 0.000000e+00 : f32
    %6 = vector.broadcast %cst_5 : f32 to vector<8x128xf32>
    %7 = arith.maximumf %5, %6 : vector<8x128xf32>
    %8 = arith.truncf %7 : vector<8x128xf32> to vector<8x128xbf16>
    %c0_6 = arith.constant 0 : index
    %c0_7 = arith.constant 0 : index
    %9 = vector.load %arg4[%c0_6, %c0_7] : memref<128x128xbf16, #tpu.memory_space<vmem>>, vector<128x128xbf16>
    %cst_8 = arith.constant dense<0.000000e+00> : vector<8x128xf32>
    %10 = tpu.matmul %8, %9, %cst_8 {dimension_numbers = #tpu.dot_dimension_numbers<[1], [0], [0], [1], [0, 0, 1, 1], [], []>} : vector<8x128xbf16>, vector<128x128xbf16>, vector<8x128xf32> -> vector<8x128xf32>
    %c0_9 = arith.constant 0 : index
    %c0_10 = arith.constant 0 : index
    %11 = vector.load %arg5[%c0_9, %c0_10] : memref<1x128xf32, #tpu.memory_space<vmem>>, vector<1x128xf32>
    %12 = vector.broadcast %11 : vector<1x128xf32> to vector<8x128xf32>
    %13 = arith.addf %10, %12 : vector<8x128xf32>
    %c0_11 = arith.constant 0 : index
    %c0_12 = arith.constant 0 : index
    %14 = vector.load %arg6[%c0_11, %c0_12] : memref<8x128xf32, #tpu.memory_space<vmem>>, vector<8x128xf32>
    tpu.vector_store %arg6[%c0_11, %c0_12], %13 {strides = array<i32>} : memref<8x128xf32, #tpu.memory_space<vmem>>, vector<8x128xf32>,
    return
  }
  func.func @transform_0(%arg0: i32) -> (i32, i32) {
    %c0_i32 = arith.constant 0 : i32
    %c0_i32_0 = arith.constant 0 : i32
    return %arg0, %c0_i32 : i32, i32
  }
  func.func @transform_1(%arg0: i32) -> (i32, i32) {
    %c0_i32 = arith.constant 0 : i32
    %c0_i32_0 = arith.constant 0 : i32
    %c0_i32_1 = arith.constant 0 : i32
    return %c0_i32, %c0_i32_0 : i32, i32
  }
  func.func @transform_2(%arg0: i32) -> (i32, i32) {
    %c0_i32 = arith.constant 0 : i32
    %c0_i32_0 = arith.constant 0 : i32
    %c0_i32_1 = arith.constant 0 : i32
    return %c0_i32, %c0_i32_0 : i32, i32
  }
  func.func @transform_3(%arg0: i32) -> (i32, i32) {
    %c0_i32 = arith.constant 0 : i32
    %c0_i32_0 = arith.constant 0 : i32
    %c0_i32_1 = arith.constant 0 : i32
    return %c0_i32, %c0_i32_0 : i32, i32
  }
  func.func @transform_4(%arg0: i32) -> (i32, i32) {
    %c0_i32 = arith.constant 0 : i32
    %c0_i32_0 = arith.constant 0 : i32
    %c0_i32_1 = arith.constant 0 : i32
    return %c0_i32, %c0_i32_0 : i32, i32
  }
  func.func @transform_5(%arg0: i32) -> (i32, i32) {
    %c0_i32 = arith.constant 0 : i32
    %c0_i32_0 = arith.constant 0 : i32
    return %arg0, %c0_i32 : i32, i32
  }
}

</mosaic_0001>

<bundles_post_ra>
// kernel: tpu_custom_call.1
= control target key start
LH: loop header
LB: loop body
LE: loop exit
PB: predicated region body
PF: predicated region fallthrough
CT: control target
= control target key end

     0   :  { %10 = vsyncpa [#allocation3], 0  ;;  %s1128_s0 = inlined_call_operand.hbm [shape: bf16[24,32], index: 0, kind: input, shape index: {}]   ;;  %s1129_s1 = inlined_call_operand.hbm [shape: bf16[32,128], index: 1, kind: input, shape index: {}]   ;;  %s1130_s2 = inlined_call_operand.vmem [shape: f32[1,128], index: 2, kind: input, shape index: {}]   ;;  %s1131_s3 = inlined_call_operand.hbm [shape: bf16[128,128], index: 3, kind: input, shape index: {}]   ;;  %s1132_s4 = inlined_call_operand.vmem [shape: f32[1,128], index: 4, kind: input, shape index: {}]   ;;  %s1133_s5 = inlined_call_operand.hbm [shape: f32[24,128], index: 5, kind: output, shape index: {}]  }
   0x1   :  { %12 = vsyncpa [#allocation3 + $0x1], 0 }
   0x2   :  { %13 = vsyncpa [#allocation6], 0 }
   0x3   :  { %14 = vsyncpa [#allocation4], 0 }
   0x4   :  { %16 = vsyncpa [#allocation4 + $0x1], 0  ;;  %s901_s18 = smov 0   ;;  %s903_s19 = smov 0  }
   0x5   :  { %s905_s20 = smov 0   ;;  %s907_s21 = smov 0  }
   0x6 LB: > { %s922_s22 = sadd.s32 4294967295, %s861_s21   ;;  %s555_s23 = sadd.s32 4294967294, %s861_s21   ;;  %s861_s21 = sphi %s907_s21, %s1152_s21   ;;  %s857_s20 = sphi %s905_s20, %s1151_s20   ;;  %s853_s19 = sphi %s903_s19, %s1150_s19   ;;  %s849_s18 = sphi %s901_s18, %s1149_s18  }
   0x7   : > { %p42_p0 = scmp.ne.s32.totalorder %s853_s19, %s849_s18  ;;  %p1134_p1 = scmp.eq.s32.totalorder %s922_s22, 0 }
   0x8   : > { %p156_p3 = scmp.eq.s32.totalorder %s555_s23, 2  ;;  %p556_p5 = scmp.ge.s32.totalorder %s861_s21, 1 }
   0x9   : > { %p931_p4 = por %p1134_p1, %p42_p0  ;;  %p163_p7 = scmp.lt.s32.totalorder %s861_s21, 4 }
   0xa   : > { %p936_p6 = por %p156_p3, %p42_p0  ;;  %s863_s27 = smov [#allocation5]  }
   0xb   : > { %s1137_s24 = scalar_select %p931_p4, 1, 0 }
   0xc   : > { %s1138_s25 = scalar_select %p936_p6, 1, 0 }
   0xd   : > { %p941_p8 = pnand %p556_p5, %p163_p7  ;;  %s175_s28 = sshll.u32 %s863_s27, 4  ;;  %s176_s28 = int_to_ptr.vmem [resolvable:$true] %s175_s28 }
   0xe   : > { %s864_s30 = smov [#allocation7]   ;;  %s705_s9 = scalar_lea.hbm %s1129_s1, 256 }
   0xf   : > { %s1139_s26 = scalar_select %p941_p8, 1, 0 }
  0x10   : > { %p636_p9 = pneg %p941_p8  ;;  %s191_s6 = sshll.u32 %s864_s30, 4  ;;  %s953_s6 = int_to_ptr.vmem [resolvable:$true] %s191_s6 }
  0x11   : > { %p706_p11 = scmp.ne.s32.totalorder %s1129_s1, %s705_s9  ;;  %p712_p3 = scmp.lt.u32.totalorder %s705_s9, %s1129_s1 }
  0x12   : > { %p949_p10 = pnand %p636_p9, %p1134_p1 }
  0x14   : > { %p707_p12 = pneg %p949_p10 }
  0x16   : > { %p708_p13 = pnand %p707_p12, %p706_p11 }
  0x18   : > { %p709_p0 = pneg %p708_p13 }
  0x1a   : > { %p714_p5 = pnand %p712_p3, %p709_p0 }
  0x1c   : > { %717 = shalt.err (!%p714_p5)
}
  0x1d   : > { %s718_s14 = scalar_lea.vmem %s176_s28, 256  ;;  %p726_p2 = scmp.lt.s32.totalorder %s176_s28, %s176_s28 }
  0x1e   : > { %p719_p7 = scmp.ne.s32.totalorder %s176_s28, %s718_s14  ;;  %p727_p6 = scmp.lt.s32.totalorder %s718_s14, %s718_s14 }
  0x20   : > { %p721_p9 = pnand %p719_p7, %p707_p12  ;;  %p728_p4 = por %p727_p6, %p726_p2 }
  0x22   : > { %p722_p1 = pneg %p721_p9 }
  0x24   : > { %p729_p8 = pnand %p728_p4, %p722_p1 }
  0x26   : > { %732 = shalt.err (!%p729_p8)
}
  0x27   : > { %s865_s15 = smov 64   ;;  %s866_s16 = smov 4  }
  0x28   : > { %639 = dma.hbm_to_vmem [thread:$0]  (!%p949_p10), %s1129_s1, 256, %s176_s28, [#allocation6], %s865_s15, %s865_s15, %s866_s16  }
  0x29   : > { %s733_s7 = scalar_lea.hbm %s1131_s3, 1024 }
  0x2a   : > { %p734_p11 = scmp.ne.s32.totalorder %s1131_s3, %s733_s7  ;;  %p740_p4 = scmp.lt.u32.totalorder %s733_s7, %s1131_s3 }
  0x2c   : > { %p736_p1 = pnand %p734_p11, %p707_p12 }
  0x2e   : > { %p737_p2 = pneg %p736_p1 }
  0x30   : > { %p742_p6 = pnand %p740_p4, %p737_p2 }
  0x32   : > { %745 = shalt.err (!%p742_p6)
}
  0x33   : > { %s746_s28 = scalar_lea.vmem %s953_s6, 1024  ;;  %p754_p3 = scmp.lt.s32.totalorder %s953_s6, %s953_s6 }
  0x34   : > { %p747_p8 = scmp.ne.s32.totalorder %s953_s6, %s746_s28  ;;  %p755_p5 = scmp.lt.s32.totalorder %s746_s28, %s746_s28 }
  0x36   : > { %p749_p13 = pnand %p747_p8, %p707_p12  ;;  %p756_p7 = por %p755_p5, %p754_p3 }
  0x38   : > { %p750_p0 = pneg %p749_p13 }
  0x3a   : > { %p757_p9 = pnand %p756_p7, %p750_p0 }
  0x3c   : > { %760 = shalt.err (!%p757_p9)
}
  0x3d   : > { %642 = dma.hbm_to_vmem [thread:$0]  (!%p949_p10), %s1131_s3, 1024, %s953_s6, [#allocation6], %s865_s15, %s865_s15, %s866_s16  }
  0x3e   : > { %s1003_s14 = sadd.s32 1, %s861_s21   ;;  %s29_s29 = sadd.s32 1, %s857_s20 }
  0x3f   : > { %s26_s17 = ssub.s32 %s861_s21, %s1003_s14  ;;  %p36_p12 = scmp.ne.s32.totalorder %s857_s20, %s853_s19 }
  0x40   : > { %p27_p11 = scmp.eq.s32.totalorder %s26_s17, 0  ;;  %p37_p1 = scmp.eq.s32.totalorder %s861_s21, 0 }
  0x41   : > { %p1141_p2 = scmp.eq.s32.totalorder %s922_s22, 2  ;;  %p653_p6 = scmp.lt.s32.totalorder %s861_s21, 3 }
  0x42   : > { %s1019_s27 = scalar_select %p27_p11, %s857_s20, %s29_s29  }
  0x43   : > { %p1013_p4 = por %p1141_p2, %p36_p12  ;;  %p38_p8 = por %p37_p1, %p36_p12 }
  0x44   : > { %s208_s30 = sand.u32 1, %s857_s20   ;;  %s561_s6 = sshll.u32 %s861_s21, 6 }
  0x45   : > { %s560_s7 = sshll.u32 %s208_s30, 2  ;;  %s1026_s8 = scalar_lea.hbm %s1128_s0, %s561_s6 }
  0x46   : > { %s212_s9 = scalar_lea.vmem [#allocation2], %s560_s7  ;;  %p1030_p10 = pnand %p653_p6, %p38_p8 }
  0x47   : > { %s219_s10 = sshll.u32 %s212_s9, 4  ;;  %s209_s28 = scalar_lea.sflag [#allocation3], %s208_s30  ;;  %s1028_s10 = int_to_ptr.vmem [resolvable:$true] %s219_s10 }
  0x48   : > { %s761_s12 = scalar_lea.hbm %s1026_s8, 64  ;;  %p763_p0 = pneg %p1030_p10 }
  0x49   : > { %p762_p13 = scmp.ne.s32.totalorder %s1026_s8, %s761_s12  ;;  %s766_s17 = scalar_lea.hbm %s1128_s0, 192 }
  0x4a   : > { %p767_p7 = scmp.lt.u32.totalorder %s1026_s8, %s1128_s0  ;;  %p768_p9 = scmp.lt.u32.totalorder %s766_s17, %s761_s12 }
  0x4b   : > { %p764_p3 = pnand %p763_p0, %p762_p13  ;;  %p770_p11 = scmp.lt.u32.totalorder %s761_s12, %s1026_s8 }
  0x4c   : > { %p769_p12 = por %p768_p9, %p767_p7 }
  0x4d   : > { %p765_p5 = pneg %p764_p3 }
  0x4e   : > { %p771_p1 = por %p770_p11, %p769_p12 }
  0x50   : > { %p772_p2 = pnand %p771_p1, %p765_p5 }
  0x52   : > { %775 = shalt.err (!%p772_p2)
}
  0x53   : > { %s776_s30 = scalar_lea.vmem %s1028_s10, 64  ;;  %s867_s15 = smov [#allocation2]  }
  0x54   : > { %p777_p6 = scmp.ne.s32.totalorder %s1028_s10, %s776_s30  ;;  %s781_s16 = sshll.u32 %s867_s15, 4  ;;  %s782_s16 = int_to_ptr.vmem [resolvable:$false] %s781_s16 }
  0x55   : > { %s783_s9 = scalar_lea.vmem %s782_s16, 128  ;;  %p784_p3 = scmp.lt.s32.totalorder %s1028_s10, %s782_s16 }
  0x56   : > { %p779_p8 = pnand %p777_p6, %p763_p0  ;;  %p785_p7 = scmp.lt.s32.totalorder %s783_s9, %s776_s30 }
  0x58   : > { %p780_p13 = pneg %p779_p8  ;;  %p786_p9 = por %p785_p7, %p784_p3 }
  0x5a   : > { %p787_p12 = pnand %p786_p9, %p780_p13 }
  0x5c   : > { %790 = shalt.err (!%p787_p12)
}
  0x5d   : > { %646 = dma.hbm_to_vmem [thread:$0]  (!%p1030_p10), %s1026_s8, 64, %s1028_s10, %s209_s28  }
  0x5e   : > { %p1144_p5 = scmp.ne.s32.totalorder %s1139_s26, 0 }
  0x5f   : > { %s1062_s12 = sand.u32 (!%p1144_p5), 1, %s853_s19   ;;  %p1145_p0 = scmp.ne.s32.totalorder (!%p1144_p5), %s1137_s24, 0 }
  0x60   : > { %228 = sbr.rel (%p1144_p5) target bundleno = 563 (0x233), region = 40  ;;  %s563_s13 = sshll.u32 (!%p1144_p5), %s1062_s12, 2 }
  0x61   : > { %s231_s29 = scalar_lea.sflag (!%p1144_p5), [#allocation3], %s1062_s12  ;;  %s234_s17 = scalar_lea.vmem (!%p1144_p5), [#allocation2], %s563_s13 }
  0x67   : > { %836 = dma.done.wait (%p1145_p0), %s231_s29, 64  }
  0x68   : > { %838 = vsyncadd (%p1145_p0), %s231_s29, 4294967232  ;;  %p1146_p11 = scmp.eq.s32.totalorder %s922_s22, 0 }
  0x6a   : > { %840 = dma.done.wait (%p1146_p11), [#allocation6], 1280   ;;  %p1147_p10 = pmov %p1146_p11 }
  0x6b   : > { %v868_v0 = vmov 0.0   ;;  %vm869_vm0 = vmmov 0   ;;  %v695_v1 = vld [vmem:[#allocation5] sm:$0xff]   ;;  %v696_v2 = vld [vmem:[#allocation5 + $0x8] sm:$0xff]   ;;  %v697_v3 = vld [vmem:[#allocation7] sm:$0xff]   ;;  %vm294_vm1 = vcmask 261120  }
  0x6c   : > { %842 = vsyncadd (%p1147_p10), [#allocation6], 4294966016  ;;  %596 = vmatprep.subr.bf16.mxu0 %v868_v0  ;;  %600 = vmatprep.mubr.msk.bf16.mxu0 %vm869_vm0, %v868_v0  ;;  %v698_v4 = vld [vmem:[#allocation7 + $0x8] sm:$0xff]   ;;  %v699_v6 = vld [vmem:[#allocation7 + $0x10] sm:$0xff]   ;;  %s566_s8 = sshll.u32 %s1062_s12, 3  ;;  %s581_s28 = sshll.u32 %s922_s22, 7 }
  0x6d   : > { %604 = vmatprep.subr.bf16.mxu1 %v868_v0  ;;  %620 = vmatprep.mubr.msk.bf16.mxu1 %vm869_vm0, %v868_v0  ;;  %v270_v5 = vld [vmem:[%s234_s17] sm:$0xf]  ;;  %v700_v7 = vld [vmem:[#allocation7 + $0x18] sm:$0xff]   ;;  %v701_v8 = vld [vmem:[#allocation7 + $0x20] sm:$0xff]   ;;  %s268_s7 = scalar_lea.vmem [#allocation8], %s566_s8  ;;  %s1085_s16 = scalar_lea.hbm %s1133_s5, %s581_s28 }
  0x6e   : > { %597 = vmatpush3.bf16.msra.mxu0 %v695_v1  ;;  %605 = vmatpush3.bf16.msra.mxu1 %v697_v3  ;;  %v702_v9 = vld [vmem:[#allocation7 + $0x28] sm:$0xff]   ;;  %v703_v10 = vld [vmem:[#allocation7 + $0x30] sm:$0xff]   ;;  %v704_v11 = vld [vmem:[#allocation7 + $0x38] sm:$0xff]   ;;  %s466_s6 = sshll.u32 %s268_s7, 4  ;;  %s453_s9 = scalar_lea.sflag [#allocation4], %s1062_s12  ;;  %s1087_s6 = int_to_ptr.vmem [resolvable:$true] %s466_s6 }
  0x6f   : > { %598 = vmatprep.subr.bf16.mxu0 %v868_v0  ;;  %606 = vmatprep.subr.bf16.mxu1 %v868_v0  ;;  %v567_v12 = vld [vmem:[%s1130_s2] ss:$0 sm:$0xff]  ;;  %s791_s22 = scalar_lea.vmem %s1087_s6, 128  ;;  %s870_s13 = smov [#allocation8]  }
  0x70   : > { %v571_v20 = vld [vmem:[%s1132_s4] ss:$0 sm:$0xff]  ;;  %p792_p1 = scmp.ne.s32.totalorder %s1087_s6, %s791_s22  ;;  %s795_s29 = sshll.u32 %s870_s13, 4  ;;  %s796_s29 = int_to_ptr.vmem [resolvable:$false] %s795_s29 }
  0x71   : > { %s797_s17 = scalar_lea.vmem %s796_s29, 256  ;;  %p798_p8 = scmp.lt.s32.totalorder %s1087_s6, %s796_s29 }
  0x72   : > { %599 = vmatpush3.bf16.msra.mxu0 %v696_v2  ;;  %607 = vmatpush3.bf16.msra.mxu1 %v698_v4  ;;  %p793_p2 = pnand %p792_p1, %p1013_p4  ;;  %p799_p13 = scmp.lt.s32.totalorder %s797_s17, %s791_s22 }
  0x73   : > { %608 = vmatprep.subr.bf16.mxu1 %v868_v0 }
  0x74   : > { %p794_p6 = pneg %p793_p2  ;;  %p800_p3 = por %p799_p13, %p798_p8 }
  0x75   : > { %601 = vmatmul.mubr.msk.bf16.vlgmr.msra.gmra.mrb[0].mxu0 %vm294_vm1, %v270_v5 }
  0x76   : > { %609 = vmatpush3.bf16.msra.mxu1 %v699_v6  ;;  %p801_p7 = pnand %p800_p3, %p794_p6 }
  0x77   : > { %610 = vmatprep.subr.bf16.mxu1 %v868_v0 }
  0x7a   : > { %611 = vmatpush3.bf16.msra.mxu1 %v700_v7 }
  0x7b   : > { %612 = vmatprep.subr.bf16.mxu1 %v868_v0 }
  0x7e   : > { %613 = vmatpush3.bf16.msra.mxu1 %v701_v8 }
  0x7f   : > { %614 = vmatprep.subr.bf16.mxu1 %v868_v0 }
  0x82   : > { %615 = vmatpush3.bf16.msra.mxu1 %v702_v9 }
  0x83   : > { %616 = vmatprep.subr.bf16.mxu1 %v868_v0 }
  0x86   : > { %617 = vmatpush3.bf16.msra.mxu1 %v703_v10 }
  0x87   : > { %618 = vmatprep.subr.bf16.mxu1 %v868_v0 }
  0x8a   : > { %619 = vmatpush3.bf16.msra.mxu1 %v704_v11 }
 0x148   : > { %v332_v13 = vpop.f32.mrb[0].mxu0 }
 0x149   : > { %v333_v14 = vadd.f32 %v567_v12, %v332_v13  ;;  %v602_v15 = vpop.f32.mrb[1].mxu0 }
 0x14a   : > { %v335_v16 = vpop.f32.mrb[2].mxu0 }
 0x14b   : > { %v338_v17 = vmax.f32 %v333_v14, 0.0  ;;  %v603_v18 = vpop.f32.mrb[3].mxu0 }
 0x14d   : > { %v339_v19 = vpack.c.bf16 %v338_v17, %v338_v17 }
 0x14f   : > { %621 = vmatmul.mubr.bf16.vlgmr.msra.gmra.mrb[0].mxu1 %v339_v19 }
 0x222   : > { %v445_v21 = vpop.f32.mrb[0].mxu1 }
 0x223   : > { %v446_v22 = vadd.f32 %v571_v20, %v445_v21  ;;  %v622_v23 = vpop.f32.mrb[1].mxu1 }
 0x224   : > { %v448_v24 = vpop.f32.mrb[2].mxu1 }
 0x225   : > { %451 = vst [vmem:[%s268_s7] sm:$0xff] %v446_v22  ;;  %v623_v25 = vpop.f32.mrb[3].mxu1 }
 0x226   : > { %804 = shalt.err (!%p801_p7)
}
 0x227   : > { %s805_s12 = scalar_lea.hbm %s1085_s16, 128  ;;  %s809_s8 = scalar_lea.hbm %s1133_s5, 384 }
 0x228   : > { %p806_p9 = scmp.ne.s32.totalorder %s1085_s16, %s805_s12  ;;  %p810_p0 = scmp.lt.u32.totalorder %s1085_s16, %s1133_s5 }
 0x229   : > { %p811_p11 = scmp.lt.u32.totalorder %s809_s8, %s805_s12  ;;  %p813_p1 = scmp.lt.u32.totalorder %s805_s12, %s1085_s16 }
 0x22a   : > { %p807_p12 = pnand %p806_p9, %p1013_p4 }
 0x22b   : > { %p812_p10 = por %p811_p11, %p810_p0 }
 0x22c   : > { %p808_p5 = pneg %p807_p12 }
 0x22d   : > { %p814_p2 = por %p813_p1, %p812_p10 }
 0x22f   : > { %p815_p6 = pnand %p814_p2, %p808_p5 }
 0x231   : > { %818 = shalt.err (!%p815_p6)
}
 0x232   : > { %634 = dma.vmem_to_hbm [thread:$0]  (%p1013_p4), %s1087_s6, 128, %s1085_s16, %s453_s9  }
 0x233 PF: > { %p656_p8 = scmp.ge.s32.totalorder %s861_s21, 2  ;;  %s478_s28 = sand.u32 1, %s849_s18  }
 0x234   : > { %p1148_p13 = scmp.ne.s32.totalorder %s1138_s25, 0  ;;  %s479_s7 = scalar_lea.sflag [#allocation4], %s478_s28 }
 0x236   : > { %p648_p3 = pnand %p656_p8, %p1148_p13 }
 0x238   : > { %844 = dma.done.wait (!%p648_p3), %s479_s7, 128  }
 0x239   : > { %846 = vsyncadd (!%p648_p3), %s479_s7, 4294967168  ;;  %p19_p7 = scmp.ge.s32.totalorder %s1003_s14, 5   ;;  %s1149_s18 = smov %s853_s19 }
 0x23a   : > { %s1150_s19 = smov %s857_s20  ;;  %s1151_s20 = smov %s1019_s27 }
 0x23b   : > { %s1152_s21 = smov %s1003_s14  ;;  %21 = sbr.rel (!%p19_p7) target bundleno = 6 (0x6), region = 93 }
 0x242   :  { %484 = vsyncpa [#allocation3], 1 }
 0x243   :  { %486 = vsyncpa [#allocation3 + $0x1], 1 }
 0x244   :  { %487 = vsyncpa [#allocation6], 1 }
 0x245   :  { %488 = vsyncpa [#allocation4], 1 }
 0x246   :  { %490 = vsyncpa [#allocation4 + $0x1], 1 }

</bundles_post_ra>
